<compile_context>
chip_gen: v5e
topology: v5e:2x2
jax: 0.10.0
libtpu: 0.0.40
codegen_flags: <defaults>
</compile_context>

<pallas_src>
import jax
import jax.numpy as jnp
from jax.experimental import pallas as pl
from jax.experimental.pallas import tpu as pltpu

IN_N = 2          # state: (position, velocity)
HID_N = 150
OUT_N = 3         # Q-values for 3 actions

HID_PAD = 256     # hidden dim padded to a lane multiple (2 x 128)
OUT_PAD = 128     # output dim padded to one full lane group
P_ROWS = 8 + HID_PAD   # packed param slab: 8-row-aligned header + w2 rows


def _mlp_kernel(x_ref, p_ref, o_ref):
    """Fused Linear(2,150) + ReLU + Linear(150,3) on one (tile of the) batch.

    Packed parameter slab `p_ref` (float32, zero padded):
      row 0        : w1[0, :]  (first input feature -> hidden)
      row 1        : w1[1, :]  (second input feature -> hidden)
      row 2        : b1
      row 3        : b2 (in the first OUT_PAD lanes)
      rows 8..8+256: w2, (HID_PAD, OUT_PAD) in the first OUT_PAD lanes
    """
    x = x_ref[...]                                    # (B, 2)
    w1r0 = p_ref[0:1, :]                              # (1, HID_PAD)
    w1r1 = p_ref[1:2, :]                              # (1, HID_PAD)
    b1 = p_ref[2:3, :]                                # (1, HID_PAD)
    b2 = p_ref[3:4, 0:OUT_PAD]                        # (1, OUT_PAD)

    # Layer 1: K=2 contraction as two VPU FMAs (no MXU push/pop round trip).
    h = x[:, 0:1] * w1r0 + x[:, 1:2] * w1r1 + b1      # (B, HID_PAD)
    h = jnp.maximum(h, 0.0)                           # ReLU; padded lanes stay 0

    # Layer 2: lane-dense (HID_PAD x OUT_PAD) MXU matmul; zero-padded rows and
    # columns contribute exactly 0 to the result.
    w2 = p_ref[8:8 + HID_PAD, 0:OUT_PAD]              # (HID_PAD, OUT_PAD), tile-aligned slice
    y = jnp.dot(h, w2, preferred_element_type=jnp.float32)   # (B, OUT_PAD)
    o_ref[...] = y + b2                               # unmasked lane-dense store


def network_forward(x, params_packed, *, tile_b=512):
    """x: (B, 2) f32 -> (B, 3) f32. Equivalent to Network.forward."""
    B = x.shape[0]
    if B > tile_b and B % tile_b == 0:
        # Batched-evaluation path: tile the batch over a parallel grid axis so
        # x/out DMAs pipeline with compute; on v7x both TensorCores are used.
        out = pl.pallas_call(
            _mlp_kernel,
            out_shape=jax.ShapeDtypeStruct((B, OUT_PAD), jnp.float32),
            grid=(B // tile_b,),
            in_specs=[
                pl.BlockSpec((tile_b, IN_N), lambda i: (i, 0)),
                pl.BlockSpec((P_ROWS, HID_PAD), lambda i: (0, 0)),
            ],
            out_specs=pl.BlockSpec((tile_b, OUT_PAD), lambda i: (i, 0)),
            compiler_params=pltpu.CompilerParams(
                dimension_semantics=("parallel",)),
        )(x, params_packed)
    else:
        # Action-selection path (small B): single un-gridded launch, whole
        # problem resident in VMEM, exactly two input DMAs (x + packed params).
        out = pl.pallas_call(
            _mlp_kernel,
            out_shape=jax.ShapeDtypeStruct((B, OUT_PAD), jnp.float32),
            in_specs=[
                pl.BlockSpec(memory_space=pltpu.MemorySpace.VMEM),
                pl.BlockSpec(memory_space=pltpu.MemorySpace.VMEM),
            ],
            out_specs=pl.BlockSpec(memory_space=pltpu.MemorySpace.VMEM),
        )(x, params_packed)
    # Lane-dense (B, 128) result; the 3 real Q-values live in the first lanes.
    return out[:, :OUT_N]


def init_params(key):
    """nn.Linear-style init (uniform +/- 1/sqrt(fan_in)); weights stored
    transposed vs torch, i.e. (in, out), so the forward pass is x @ W + b."""
    k1, k2, k3, k4 = jax.random.split(key, 4)
    bound1 = 1.0 / jnp.sqrt(jnp.float32(IN_N))
    bound2 = 1.0 / jnp.sqrt(jnp.float32(HID_N))
    w1 = jax.random.uniform(k1, (IN_N, HID_N), jnp.float32, -bound1, bound1)
    b1 = jax.random.uniform(k2, (1, HID_N), jnp.float32, -bound1, bound1)
    w2 = jax.random.uniform(k3, (HID_N, OUT_N), jnp.float32, -bound2, bound2)
    b2 = jax.random.uniform(k4, (1, OUT_N), jnp.float32, -bound2, bound2)
    return w1, b1, w2, b2


def pack_params(w1, b1, w2, b2):
    """Pack all parameters into one zero-padded (P_ROWS, HID_PAD) f32 slab."""
    p = jnp.zeros((P_ROWS, HID_PAD), jnp.float32)
    p = p.at[0:IN_N, 0:HID_N].set(w1)
    p = p.at[2, 0:HID_N].set(b1.reshape(-1))
    p = p.at[3, 0:OUT_N].set(b2.reshape(-1))
    p = p.at[8:8 + HID_N, 0:OUT_N].set(w2)
    return p


if __name__ == "__main__":
    key = jax.random.PRNGKey(0)
    pkey, xkey1, xkey2 = jax.random.split(key, 3)
    w1, b1, w2, b2 = init_params(pkey)
    params = pack_params(w1, b1, w2, b2)

    def ref_forward(x):
        # Layer-1 written as the explicit K=2 FMA (mathematically identical to
        # x @ w1); keeps the check independent of the backend's default matmul
        # precision for the tiny K=2 contraction. Layer-2 is a plain matmul.
        h = jnp.maximum(x[:, 0:1] * w1[0:1, :] + x[:, 1:2] * w1[1:2, :] + b1, 0.0)
        return h @ w2 + b2

    # Small batch -> single un-gridded launch (RL action-selection path).
    x_small = jax.random.normal(xkey1, (8, IN_N), jnp.float32)
    out_small = jax.block_until_ready(network_forward(x_small, params))
    assert out_small.shape == (8, OUT_N)
    assert jnp.allclose(out_small, ref_forward(x_small), atol=1e-4, rtol=1e-4)

    # Large batch -> batch-tiled "parallel" grid (batched-evaluation path).
    x_big = jax.random.normal(xkey2, (1024, IN_N), jnp.float32)
    out_big = jax.block_until_ready(network_forward(x_big, params))
    assert out_big.shape == (1024, OUT_N)
    assert jnp.allclose(out_big, ref_forward(x_big), atol=1e-4, rtol=1e-4)

    # TODO(synk): nn.MSELoss / the SARSA update are training-time ops outside
    # Network.forward and are not implemented here.
    print("KERNEL_OK")
</pallas_src>

<mosaic_0001>
module attributes {stable_mosaic.version = 11 : i64} {
  func.func @_mlp_kernel(%arg0: memref<8x2xf32, #tpu.memory_space<vmem>>, %arg1: memref<264x256xf32, #tpu.memory_space<vmem>>, %arg2: memref<8x128xf32, #tpu.memory_space<vmem>>) attributes {dimension_semantics = [], scalar_prefetch = 0 : i64, scratch_operands = 0 : i64, tpu.core_type = #tpu.core_type<tc>} {
    %c0 = arith.constant 0 : index
    %c0_0 = arith.constant 0 : index
    %0 = vector.load %arg0[%c0, %c0_0] : memref<8x2xf32, #tpu.memory_space<vmem>>, vector<8x2xf32>
    %c0_1 = arith.constant 0 : index
    %c0_2 = arith.constant 0 : index
    %1 = vector.load %arg1[%c0_1, %c0_2] : memref<264x256xf32, #tpu.memory_space<vmem>>, vector<1x256xf32>
    %c1 = arith.constant 1 : index
    %c0_3 = arith.constant 0 : index
    %2 = vector.load %arg1[%c1, %c0_3] : memref<264x256xf32, #tpu.memory_space<vmem>>, vector<1x256xf32>
    %c2 = arith.constant 2 : index
    %c0_4 = arith.constant 0 : index
    %3 = vector.load %arg1[%c2, %c0_4] : memref<264x256xf32, #tpu.memory_space<vmem>>, vector<1x256xf32>
    %c3 = arith.constant 3 : index
    %c0_5 = arith.constant 0 : index
    %4 = vector.load %arg1[%c3, %c0_5] : memref<264x256xf32, #tpu.memory_space<vmem>>, vector<1x128xf32>
    %5 = vector.extract_strided_slice %0 {offsets = [0, 0], sizes = [8, 1], strides = [1, 1]} : vector<8x2xf32> to vector<8x1xf32>
    %6 = vector.broadcast %5 : vector<8x1xf32> to vector<8x256xf32>
    %7 = vector.broadcast %1 : vector<1x256xf32> to vector<8x256xf32>
    %8 = arith.mulf %6, %7 : vector<8x256xf32>
    %9 = vector.extract_strided_slice %0 {offsets = [0, 1], sizes = [8, 1], strides = [1, 1]} : vector<8x2xf32> to vector<8x1xf32>
    %10 = vector.broadcast %9 : vector<8x1xf32> to vector<8x256xf32>
    %11 = vector.broadcast %2 : vector<1x256xf32> to vector<8x256xf32>
    %12 = arith.mulf %10, %11 : vector<8x256xf32>
    %13 = arith.addf %8, %12 : vector<8x256xf32>
    %14 = vector.broadcast %3 : vector<1x256xf32> to vector<8x256xf32>
    %15 = arith.addf %13, %14 : vector<8x256xf32>
    %cst = arith.constant 0.000000e+00 : f32
    %16 = vector.broadcast %cst : f32 to vector<8x256xf32>
    %17 = arith.maximumf %15, %16 : vector<8x256xf32>
    %c8 = arith.constant 8 : index
    %c0_6 = arith.constant 0 : index
    %18 = vector.load %arg1[%c8, %c0_6] : memref<264x256xf32, #tpu.memory_space<vmem>>, vector<256x128xf32>
    %cst_7 = arith.constant dense<0.000000e+00> : vector<8x128xf32>
    %19 = tpu.matmul %17, %18, %cst_7 {dimension_numbers = #tpu.dot_dimension_numbers<[1], [0], [0], [1], [0, 0, 1, 1], [], []>} : vector<8x256xf32>, vector<256x128xf32>, vector<8x128xf32> -> vector<8x128xf32>
    %20 = vector.broadcast %4 : vector<1x128xf32> to vector<8x128xf32>
    %21 = arith.addf %19, %20 : vector<8x128xf32>
    %c0_8 = arith.constant 0 : index
    %c0_9 = arith.constant 0 : index
    %22 = vector.load %arg2[%c0_8, %c0_9] : memref<8x128xf32, #tpu.memory_space<vmem>>, vector<8x128xf32>
    tpu.vector_store %arg2[%c0_8, %c0_9], %21 {strides = array<i32>} : memref<8x128xf32, #tpu.memory_space<vmem>>, vector<8x128xf32>,
    return
  }
}

</mosaic_0001>

<bundles_post_ra>
// kernel: tpu_custom_call.1
= control target key start
LH: loop header
LB: loop body
LE: loop exit
PB: predicated region body
PF: predicated region fallthrough
CT: control target
= control target key end

     0   :  { %7 = vsyncpa [#allocation3], 0  ;;  %s249_s0 = inlined_call_operand.vmem [shape: f32[8,2], index: 0, kind: input, shape index: {}]   ;;  %s250_s1 = inlined_call_operand.hbm [shape: f32[264,256], index: 1, kind: input, shape index: {}]   ;;  %s251_s2 = inlined_call_operand.hbm [shape: f32[8,128], index: 2, kind: output, shape index: {}]  }
   0x1   :  { %8 = vsyncpa [#allocation4], 0  ;;  %s15_s11 = sshll.u32 %s250_s1, 4  ;;  %s219_s12 = smov [#allocation2]   ;;  %s16_s11 = int_to_ptr.hbm [resolvable:$true] %s15_s11 }
   0x2   :  { %s17_s13 = sshll.u32 %s219_s12, 4  ;;  %s220_s14 = smov 256   ;;  %s18_s13 = int_to_ptr.vmem [resolvable:$true] %s17_s13 }
   0x3   :  { %s221_s15 = smov 16  }
   0x4   :  { %23 = dma.hbm_to_vmem [thread:$0]  %s16_s11, 8448, %s18_s13, [#allocation3], %s220_s14, %s220_s14, %s221_s15  }
   0x5   :  { %215 = dma.done.wait [#allocation3], 8448  }
   0x6   :  { %216 = vsyncadd [#allocation3], 4294958848  ;;  %v222_v0 = vmov 0   ;;  %v28_v1 = vld [vmem:[%s249_s0] sm:$0xff]  ;;  %v83_v4 = vld [vmem:[#allocation2 + $0xf0] sm:$0xff]  ;;  %v223_v13 = vmov 1  }
   0x7   :  { %165 = vset.pattern.permute.xlu0 %v222_v0  ;;  %v84_v2 = vld [vmem:[#allocation2 + $0x100] sm:$0xff]  ;;  %v99_v5 = vld [vmem:[#allocation2 + $0x1f0] sm:$0xff]  ;;  %s224_s0 = smov [#allocation5]   ;;  %s149_s20 = sshll.u32 %s251_s2, 4  ;;  %s150_s20 = int_to_ptr.hbm [resolvable:$true] %s149_s20 }
   0x8   :  { %v100_v3 = vld [vmem:[#allocation2 + $0x200] sm:$0xff]  ;;  %37 = vperm.xlu0 %165, %v28_v1   ;;  %101 = vmatpush.msra.mxu0 %v84_v2  ;;  %v81_v8 = vld [vmem:[#allocation2 + $0xd0] sm:$0xff]  ;;  %s147_s1 = sshll.u32 %s224_s0, 4  ;;  %s148_s1 = int_to_ptr.vmem [resolvable:$true] %s147_s1 }
   0x9   :  { %121 = vmatpush.msra.mxu1 %v100_v3  ;;  %v82_v6 = vld [vmem:[#allocation2 + $0xe0] sm:$0xff]  ;;  %v97_v9 = vld [vmem:[#allocation2 + $0x1d0] sm:$0xff] }
   0xa   :  { %102 = vmatpush.msra.mxu0 %v83_v4  ;;  %v98_v7 = vld [vmem:[#allocation2 + $0x1e0] sm:$0xff]  ;;  %v79_v12 = vld [vmem:[#allocation2 + $0xb0] sm:$0xff] }
   0xb   :  { %122 = vmatpush.msra.mxu1 %v99_v5  ;;  %v80_v10 = vld [vmem:[#allocation2 + $0xc0] sm:$0xff]  ;;  %v95_v14 = vld [vmem:[#allocation2 + $0x1b0] sm:$0xff] }
   0xc   :  { %103 = vmatpush.msra.mxu0 %v82_v6  ;;  %v96_v11 = vld [vmem:[#allocation2 + $0x1c0] sm:$0xff]  ;;  %v77_v17 = vld [vmem:[#allocation2 + $0x90] sm:$0xff] }
   0xd   :  { %123 = vmatpush.msra.mxu1 %v98_v7  ;;  %v78_v15 = vld [vmem:[#allocation2 + $0xa0] sm:$0xff]  ;;  %v93_v18 = vld [vmem:[#allocation2 + $0x190] sm:$0xff] }
   0xe   :  { %104 = vmatpush.msra.mxu0 %v81_v8  ;;  %v94_v16 = vld [vmem:[#allocation2 + $0x1a0] sm:$0xff]  ;;  %v75_v21 = vld [vmem:[#allocation2 + $0x70] sm:$0xff] }
   0xf   :  { %124 = vmatpush.msra.mxu1 %v97_v9  ;;  %v76_v19 = vld [vmem:[#allocation2 + $0x80] sm:$0xff]  ;;  %v91_v22 = vld [vmem:[#allocation2 + $0x170] sm:$0xff] }
  0x10   :  { %166 = vset.pattern.permute.xlu0 %v223_v13  ;;  %105 = vmatpush.msra.mxu0 %v80_v10  ;;  %v92_v20 = vld [vmem:[#allocation2 + $0x180] sm:$0xff]  ;;  %v73_v25 = vld [vmem:[#allocation2 + $0x50] sm:$0xff] }
  0x11   :  { %48 = vperm.xlu0 %166, %v28_v1   ;;  %125 = vmatpush.msra.mxu1 %v96_v11  ;;  %v74_v23 = vld [vmem:[#allocation2 + $0x60] sm:$0xff]  ;;  %v89_v26 = vld [vmem:[#allocation2 + $0x150] sm:$0xff] }
  0x12   :  { %106 = vmatpush.msra.mxu0 %v79_v12  ;;  %v90_v24 = vld [vmem:[#allocation2 + $0x160] sm:$0xff]  ;;  %v71_v29 = vld [vmem:[#allocation2 + $0x30] sm:$0xff] }
  0x13   :  { %126 = vmatpush.msra.mxu1 %v95_v14  ;;  %v72_v27 = vld [vmem:[#allocation2 + $0x40] sm:$0xff]  ;;  %v87_v30 = vld [vmem:[#allocation2 + $0x130] sm:$0xff] }
  0x14   :  { %107 = vmatpush.msra.mxu0 %v78_v15  ;;  %v88_v28 = vld [vmem:[#allocation2 + $0x140] sm:$0xff]  ;;  %v69_v33 = vld [vmem:[#allocation2 + $0x10] sm:$0xff] }
  0x15   :  { %127 = vmatpush.msra.mxu1 %v94_v16  ;;  %v70_v31 = vld [vmem:[#allocation2 + $0x20] sm:$0xff]  ;;  %v85_v34 = vld [vmem:[#allocation2 + $0x110] sm:$0xff] }
  0x16   :  { %108 = vmatpush.msra.mxu0 %v77_v17  ;;  %v86_v32 = vld [vmem:[#allocation2 + $0x120] sm:$0xff] }
  0x17   :  { %128 = vmatpush.msra.mxu1 %v93_v18  ;;  %v29_v36 = vld [vmem:[#allocation2] ss:$8 sm:$0x3]  ;;  %v31_v37 = vld [vmem:[#allocation2 + $0x1] ss:$8 sm:$0x3] }
  0x18   :  { %109 = vmatpush.msra.mxu0 %v76_v19  ;;  %v41_v38 = vperm.slane %v29_v36, 0  ;;  %v42_v39 = vperm.slane %v29_v36, 1  ;;  %v52_v40 = vperm.slane %v31_v37, 0  ;;  %v53_v41 = vperm.slane %v31_v37, 1  ;;  %v34_v56 = vld [vmem:[#allocation2 + $0x3] ss:$0 sm:$0xff] }
  0x19   :  { %129 = vmatpush.msra.mxu1 %v92_v20  ;;  %v33_v42 = vld [vmem:[#allocation2 + $0x2] ss:$8 sm:$0x3] }
  0x1a   :  { %110 = vmatpush.msra.mxu0 %v75_v21  ;;  %v61_v44 = vperm.slane %v33_v42, 0  ;;  %v62_v45 = vperm.slane %v33_v42, 1 }
  0x1b   :  { %130 = vmatpush.msra.mxu1 %v91_v22 }
  0x1c   :  { %111 = vmatpush.msra.mxu0 %v74_v23 }
  0x1d   :  { %131 = vmatpush.msra.mxu1 %v90_v24 }
  0x1e   :  { %112 = vmatpush.msra.mxu0 %v73_v25 }
  0x1f   :  { %132 = vmatpush.msra.mxu1 %v89_v26 }
  0x20   :  { %113 = vmatpush.msra.mxu0 %v72_v27 }
  0x21   :  { %133 = vmatpush.msra.mxu1 %v88_v28 }
  0x22   :  { %114 = vmatpush.msra.mxu0 %v71_v29 }
  0x23   :  { %134 = vmatpush.msra.mxu1 %v87_v30 }
  0x24   :  { %115 = vmatpush.msra.mxu0 %v70_v31 }
  0x25   :  { %135 = vmatpush.msra.mxu1 %v86_v32 }
  0x26   :  { %116 = vmatpush.msra.mxu0 %v69_v33 }
  0x27   :  { %136 = vmatpush.msra.mxu1 %v85_v34 }
  0x7a   :  { %v38_v35 = vpop.permute.xlu0 %37 }
  0x7b   :  { %v45_v46 = vmul.f32 %v41_v38, %v38_v35  ;;  %v46_v47 = vmul.f32 %v42_v39, %v38_v35 }
  0x83   :  { %v49_v43 = vpop.permute.xlu0 %48 }
  0x84   :  { %v56_v48 = vmul.f32 %v52_v40, %v49_v43  ;;  %v57_v49 = vmul.f32 %v53_v41, %v49_v43 }
  0x86   :  { %v58_v50 = vadd.f32 %v56_v48, %v45_v46  ;;  %v59_v51 = vadd.f32 %v57_v49, %v46_v47 }
  0x88   :  { %v65_v52 = vadd.f32 %v61_v44, %v58_v50  ;;  %v66_v53 = vadd.f32 %v62_v45, %v59_v51 }
  0x8a   :  { %v67_v54 = vmax.f32 %v65_v52, 0.0  ;;  %v68_v55 = vmax.f32 %v66_v53, 0.0 }
  0x8c   :  { %117 = vmatmul.f32.vlgmr.msra.gmra.mxu0 %v67_v54  ;;  %137 = vmatmul.f32.vlgmr.msra.gmra.mxu1 %v68_v55 }
 0x109   :  { %v118_v57 = vpop.f32.mrf.mxu0  ;;  %v138_v59 = vpop.f32.mrf.mxu1 }
 0x10a   :  { %v119_v58 = vadd.f32 %v118_v57, %v34_v56 }
 0x10c   :  { %v139_v60 = vadd.f32 %v138_v59, %v119_v58 }
 0x10e   :  { %141 = vst [vmem:[#allocation5] sm:$0xff] %v139_v60 }
 0x10f   :  { %152 = dma.vmem_to_hbm [thread:$0]  %s148_s1, 128, %s150_s20, [#allocation4]  }
 0x110   :  { %217 = dma.done.wait [#allocation4], 128  }
 0x111   :  { %218 = vsyncadd [#allocation4], 4294967168 }
 0x112   :  { %157 = vsyncpa [#allocation3], 1 }
 0x113   :  { %158 = vsyncpa [#allocation4], 1 }

</bundles_post_ra>
